<compile_context>
chip_gen: v7x
topology: tpu7x:2x2x1
jax: 0.10.0
libtpu: 0.0.40
codegen_flags: <defaults>
</compile_context>

<pallas_src>
import functools

import jax
import jax.numpy as jnp
from jax.experimental import pallas as pl
from jax.experimental.pallas import tpu as pltpu

# TODO(synk): nn.Dropout(p=0.5) is only active in training mode; this forward
# reproduces eval-mode semantics (dropout == identity).

_LN_EPS = 1e-5
_LANE = 128
_MIB = 1024 * 1024


def _round_up(v, m):
    return (v + m - 1) // m * m


# --------------------------------------------------------------------------
# Kernel
# --------------------------------------------------------------------------
def _fused_kernel(x_ref, *refs, apply_act_norm, real_outs):
    """Runs one row-tile through a chunk of consecutive layers.

    refs layout: per layer (w_ref, aux_ref) where aux packs
    [bias; gamma; beta] ((3, d_pad), or (1, d_pad) for the final layer);
    the single output ref comes last.
    """
    o_ref = refs[-1]
    params = refs[:-1]

    h = x_ref[...]                                        # (tm, d_in_pad) bf16
    for idx, (apply_ln, d_real) in enumerate(zip(apply_act_norm, real_outs)):
        w_ref = params[2 * idx]
        aux_ref = params[2 * idx + 1]
        # bf16 MXU matmul, f32 accumulation.
        y = jnp.dot(h, w_ref[...], preferred_element_type=jnp.float32)
        y = y + aux_ref[0:1, :]                           # bias
        if apply_ln:
            y = jnp.maximum(y, 0.0)                       # ReLU
            # Padded lanes of y are exactly zero (zero-padded W cols + bias,
            # then ReLU), so no lane mask is needed for the statistics.
            inv_d = 1.0 / float(d_real)
            mu = jnp.sum(y, axis=-1, keepdims=True) * inv_d
            var = jnp.sum(y * y, axis=-1, keepdims=True) * inv_d - mu * mu
            var = jnp.maximum(var, 0.0)
            y = (y - mu) * jax.lax.rsqrt(var + _LN_EPS)
            # gamma/beta zero-padded -> padded lanes return to exactly zero.
            y = y * aux_ref[1:2, :] + aux_ref[2:3, :]
            h = y.astype(jnp.bfloat16)                    # next layer's MXU input
        else:
            h = y
    o_ref[...] = h.astype(o_ref.dtype)                    # lane-dense store


# --------------------------------------------------------------------------
# Host-side helpers
# --------------------------------------------------------------------------
def _vmem_limit_bytes():
    """Generation-aware VMEM budget: ~100 MiB on 128-MiB chips, ~52 on v7x."""
    phys = 128 * _MIB
    try:
        info = pltpu.get_tpu_info()
        phys = int(getattr(info, "vmem_capacity_bytes", phys))
    except Exception:
        pass
    return min(phys - 12 * _MIB, 100 * _MIB)


def _act_bytes(tm, max_d_pad):
    """Per-grid-step activation working set estimate."""
    return (2 * tm * max_d_pad * 2        # double-buffered bf16 input tile
            + 2 * tm * max_d_pad * 4      # double-buffered output tile (f32 worst case)
            + 4 * tm * max_d_pad * 4)     # in-kernel f32 working set


def _pick_row_tile(rows, max_d_pad, act_budget):
    # Cap so that the row grid has length >= 2 whenever rows >= 32, giving
    # v7x's second TensorCore real work; keep the tile a multiple of 16
    # (native bf16 sublane tile) and as large as the VMEM budget allows
    # (amortises the ~0.35us per-grid-step pipeline overhead).
    cap = max(16, _round_up((max(rows, 1) + 1) // 2, 16))
    tm = 128
    for cand in (1024, 512, 256, 128):
        if _act_bytes(cand, max_d_pad) <= act_budget:
            tm = cand
            break
    return min(tm, cap)


def _const_spec(shape, single_buffer):
    """Constant-index (VMEM-resident) parameter block."""
    if single_buffer:
        try:
            return pl.BlockSpec(shape, lambda i: (0, 0),
                                pipeline_mode=pl.Buffered(1))
        except TypeError:       # older jax without pipeline_mode kwarg
            pass
    return pl.BlockSpec(shape, lambda i: (0, 0))


def prepare_seq_linear_params(params, ft_in):
    """Pad / cast / pack parameters ONCE (hoisted out of the forward path).

    params: list of (w (fan_in, fan_out), b (1, fan_out), gamma, beta) f32.
    Weights -> zero-padded bf16 (dinp, doutp); bias/gamma/beta packed into one
    zero-padded f32 (3, doutp) block ((1, doutp) for the last layer).
    """
    n_layers = len(params)
    real_dims = [int(ft_in)] + [int(w.shape[1]) for (w, _, _, _) in params]
    pad_dims = [_round_up(d, _LANE) for d in real_dims]
    # TODO(synk): on v6e/v7x, padding the contraction dim to 256 instead of 128
    # slightly improves MXU utilisation for large hidden dims; irrelevant here.
    layers = []
    for idx, (w, b, gamma, beta) in enumerate(params):
        din, dout = real_dims[idx], real_dims[idx + 1]
        dinp, doutp = pad_dims[idx], pad_dims[idx + 1]
        w_p = jnp.pad(w, ((0, dinp - din), (0, doutp - dout))).astype(jnp.bfloat16)
        b_p = jnp.pad(b.reshape(1, -1), ((0, 0), (0, doutp - dout)))
        if idx != n_layers - 1:
            g_p = jnp.pad(gamma.reshape(1, -1), ((0, 0), (0, doutp - dout)))
            be_p = jnp.pad(beta.reshape(1, -1), ((0, 0), (0, doutp - dout)))
            aux = jnp.concatenate([b_p, g_p, be_p], axis=0).astype(jnp.float32)
        else:
            aux = b_p.astype(jnp.float32)
        layers.append((w_p, aux, dout, doutp))
    return {
        "d_in_real": int(ft_in),
        "d_in_pad": pad_dims[0],
        "d_out_real": real_dims[-1],
        "layers": layers,
    }


def seq_linear_forward(x, prepared, *, interpret=False):
    """x: (..., ft_in) float32. prepared: output of prepare_seq_linear_params.

    Returns (..., ft_out[-1]) float32.
    """
    *lead, ft_in = x.shape
    if int(ft_in) != prepared["d_in_real"]:
        raise ValueError("last dim of x does not match prepared ft_in")
    rows = 1
    for d in lead:
        rows *= int(d)

    layers = prepared["layers"]
    n_layers = len(layers)
    d_in_pad = prepared["d_in_pad"]
    max_d_pad = max([d_in_pad] + [l[3] for l in layers])

    vmem_limit = _vmem_limit_bytes()
    budget = vmem_limit - 4 * _MIB

    def layer_bytes(layer, buf_count=1):
        w_p, _aux, _dr, doutp = layer
        # bf16 weight + (8-sublane-padded) packed aux block.
        return buf_count * (int(w_p.size) * 2 + 8 * doutp * 4)

    total_param_bytes = sum(layer_bytes(l) for l in layers)
    act_budget = max(budget - total_param_bytes, budget // 4)
    tm = _pick_row_tile(rows, max_d_pad, act_budget)
    param_budget = max(budget - _act_bytes(tm, max_d_pad),
                       layer_bytes(layers[0]))

    rows_pad = _round_up(max(rows, 1), tm)
    x2 = x.reshape(rows, int(ft_in)).astype(jnp.float32)
    x_p = jnp.pad(x2, ((0, rows_pad - rows), (0, d_in_pad - int(ft_in)))
                  ).astype(jnp.bfloat16)

    # Greedy layer chunking: each chunk's resident (single-buffered) params
    # must fit the VMEM budget.  The fully-fused single chunk is the common
    # case; chunking only kicks in for very large stacks (e.g. v7x's 64 MiB).
    chunks, cur, cur_b = [], [], 0
    for layer in layers:
        lb = layer_bytes(layer)
        if cur and cur_b + lb > param_budget:
            chunks.append(cur)
            cur, cur_b = [], 0
        cur.append(layer)
        cur_b += lb
    chunks.append(cur)
    # TODO(synk): a single layer whose padded bf16 weight alone exceeds the
    # VMEM budget would additionally need a K-tiled accumulator grid axis
    # (f32 VMEM accumulator + pl.when init/finalize); not implemented.

    def run_chunk(h, chunk, din_pad, apply_acts, real_outs, out_dtype,
                  single_buffer):
        flat = [h]
        in_specs = [pl.BlockSpec((tm, din_pad), lambda i: (i, 0))]
        for (w_p, aux, _dr, _dp) in chunk:
            flat += [w_p, aux]
            in_specs += [_const_spec(w_p.shape, single_buffer),
                         _const_spec(aux.shape, single_buffer)]
        d_out_pad = chunk[-1][3]
        kernel = functools.partial(_fused_kernel,
                                   apply_act_norm=tuple(apply_acts),
                                   real_outs=tuple(real_outs))
        return pl.pallas_call(
            kernel,
            out_shape=jax.ShapeDtypeStruct((rows_pad, d_out_pad), out_dtype),
            grid_spec=pltpu.PrefetchScalarGridSpec(
                num_scalar_prefetch=0,
                grid=(rows_pad // tm,),
                in_specs=in_specs,
                out_specs=pl.BlockSpec((tm, d_out_pad), lambda i: (i, 0)),
            ),
            compiler_params=pltpu.CompilerParams(
                dimension_semantics=("parallel",),
                vmem_limit_bytes=vmem_limit,
            ),
            interpret=interpret,
        )(*flat)

    h = x_p
    din_pad = d_in_pad
    layer_idx = 0
    single_buffer = True
    for ci, chunk in enumerate(chunks):
        apply_acts, real_outs = [], []
        for (_w, _aux, d_out_real, _dp) in chunk:
            apply_acts.append(layer_idx != n_layers - 1)
            real_outs.append(d_out_real)
            layer_idx += 1
        out_dtype = jnp.float32 if ci == len(chunks) - 1 else jnp.bfloat16
        try:
            h = run_chunk(h, chunk, din_pad, apply_acts, real_outs, out_dtype,
                          single_buffer)
        except Exception:
            # Fallback for jax builds where Buffered(1) single-buffering of
            # constant-index specs is unsupported.
            if not single_buffer:
                raise
            single_buffer = False
            h = run_chunk(h, chunk, din_pad, apply_acts, real_outs, out_dtype,
                          single_buffer)
        din_pad = chunk[-1][3]

    out = h[:rows, :prepared["d_out_real"]].astype(jnp.float32)
    return out.reshape(*lead, prepared["d_out_real"])


def init_seq_linear_params(key, ft_in, ft_out):
    """Deterministic init matching SeqLinear.__init__ shapes.

    Weights: kaiming_normal_ (std = sqrt(2/fan_in)); biases: nn.Linear default
    uniform(-1/sqrt(fan_in), 1/sqrt(fan_in)); LayerNorm affine: gamma=1, beta=0.
    Weights are stored transposed (fan_in, fan_out) so the kernel does x @ W.
    """
    params = []
    dims = [ft_in] + list(ft_out)
    for idx in range(len(ft_out)):
        fan_in, fan_out = dims[idx], dims[idx + 1]
        key, kw, kb = jax.random.split(key, 3)
        w = jax.random.normal(kw, (fan_in, fan_out), jnp.float32) * jnp.sqrt(
            2.0 / fan_in)
        bound = 1.0 / jnp.sqrt(float(fan_in))
        b = jax.random.uniform(kb, (1, fan_out), jnp.float32, -bound, bound)
        gamma = jnp.ones((1, fan_out), jnp.float32)
        beta = jnp.zeros((1, fan_out), jnp.float32)
        params.append((w, b, gamma, beta))
    return params


if __name__ == "__main__":
    key = jax.random.PRNGKey(0)
    k_x, k_p = jax.random.split(key)

    batch, seq, ft_in = 4, 8, 32        # 32 rows -> row grid length 2
    ft_out = [64, 16]

    x = jax.random.normal(k_x, (batch, seq, ft_in), jnp.float32)
    params = init_seq_linear_params(k_p, ft_in, ft_out)
    prepared = prepare_seq_linear_params(params, ft_in)

    out = seq_linear_forward(x, prepared)
    jax.block_until_ready(out)
    assert out.shape == (batch, seq, ft_out[-1])

    out_rows = out.reshape(batch * seq, ft_out[-1])
    x_rows = x.reshape(batch * seq, ft_in)

    # Reference A: exact original-module math in f32 (loose tolerance because
    # the kernel matmuls run in bf16 on the MXU).
    ref = x_rows
    for idx, (w, b, gamma, beta) in enumerate(params):
        ref = ref @ w + b
        if idx != len(params) - 1:
            ref = jnp.maximum(ref, 0.0)
            mu = jnp.mean(ref, axis=-1, keepdims=True)
            var = jnp.mean((ref - mu) ** 2, axis=-1, keepdims=True)
            ref = (ref - mu) * jax.lax.rsqrt(var + _LN_EPS) * gamma + beta
    assert jnp.allclose(out_rows, ref, atol=1.5e-1, rtol=1e-1), (
        float(jnp.max(jnp.abs(out_rows - ref))))

    # Reference B: same bf16-matmul numerics as the kernel (tighter tolerance).
    refb = x_rows
    for idx, (w, b, gamma, beta) in enumerate(params):
        refb = jnp.dot(refb.astype(jnp.bfloat16), w.astype(jnp.bfloat16),
                       preferred_element_type=jnp.float32) + b
        if idx != len(params) - 1:
            refb = jnp.maximum(refb, 0.0)
            mu = jnp.mean(refb, axis=-1, keepdims=True)
            var = jnp.mean((refb - mu) ** 2, axis=-1, keepdims=True)
            refb = (refb - mu) * jax.lax.rsqrt(var + _LN_EPS) * gamma + beta
    assert jnp.allclose(out_rows, refb, atol=3e-2, rtol=3e-2), (
        float(jnp.max(jnp.abs(out_rows - refb))))

    print("KERNEL_OK")
</pallas_src>

<mosaic_0001>
module attributes {stable_mosaic.version = 11 : i64} {
  func.func @_fused_kernel(%arg0: i32, %arg1: memref<16x128xbf16, #tpu.memory_space<vmem>>, %arg2: memref<128x128xbf16, #tpu.memory_space<vmem>>, %arg3: memref<3x128xf32, #tpu.memory_space<vmem>>, %arg4: memref<128x128xbf16, #tpu.memory_space<vmem>>, %arg5: memref<1x128xf32, #tpu.memory_space<vmem>>, %arg6: memref<16x128xf32, #tpu.memory_space<vmem>>) attributes {dimension_semantics = [#tpu.dimension_semantics<parallel>], iteration_bounds = array<i64: 2>, scalar_prefetch = 0 : i64, scratch_operands = 0 : i64, tpu.core_type = #tpu.core_type<tc>, window_params = [{transform_indices = @transform_0, window_bounds = array<i64: 16, 128>}, {pipeline_mode = #tpu.pipeline_mode<synchronous>, transform_indices = @transform_1, window_bounds = array<i64: 128, 128>}, {pipeline_mode = #tpu.pipeline_mode<synchronous>, transform_indices = @transform_2, window_bounds = array<i64: 3, 128>}, {pipeline_mode = #tpu.pipeline_mode<synchronous>, transform_indices = @transform_3, window_bounds = array<i64: 128, 128>}, {pipeline_mode = #tpu.pipeline_mode<synchronous>, transform_indices = @transform_4, window_bounds = array<i64: 1, 128>}, {transform_indices = @transform_5, window_bounds = array<i64: 16, 128>}]} {
    %c0 = arith.constant 0 : index
    %c0_0 = arith.constant 0 : index
    %0 = vector.load %arg1[%c0, %c0_0] : memref<16x128xbf16, #tpu.memory_space<vmem>>, vector<16x128xbf16>
    %c0_1 = arith.constant 0 : index
    %c0_2 = arith.constant 0 : index
    %1 = vector.load %arg2[%c0_1, %c0_2] : memref<128x128xbf16, #tpu.memory_space<vmem>>, vector<128x128xbf16>
    %cst = arith.constant dense<0.000000e+00> : vector<16x128xf32>
    %2 = tpu.matmul %0, %1, %cst {dimension_numbers = #tpu.dot_dimension_numbers<[1], [0], [0], [1], [0, 0, 1, 1], [], []>} : vector<16x128xbf16>, vector<128x128xbf16>, vector<16x128xf32> -> vector<16x128xf32>
    %c0_3 = arith.constant 0 : index
    %c0_4 = arith.constant 0 : index
    %3 = vector.load %arg3[%c0_3, %c0_4] : memref<3x128xf32, #tpu.memory_space<vmem>>, vector<1x128xf32>
    %4 = vector.broadcast %3 : vector<1x128xf32> to vector<16x128xf32>
    %5 = arith.addf %2, %4 : vector<16x128xf32>
    %cst_5 = arith.constant 0.000000e+00 : f32
    %6 = vector.broadcast %cst_5 : f32 to vector<16x128xf32>
    %7 = arith.maximumf %5, %6 : vector<16x128xf32>
    %cst_6 = arith.constant dense<0.000000e+00> : vector<16xf32>
    %8 = vector.multi_reduction <add>, %7, %cst_6 [1] : vector<16x128xf32> to vector<16xf32>
    %9 = vector.shape_cast %8 : vector<16xf32> to vector<16x1xf32>
    %cst_7 = arith.constant 1.562500e-02 : f32
    %10 = vector.broadcast %cst_7 : f32 to vector<16x1xf32>
    %11 = arith.mulf %9, %10 : vector<16x1xf32>
    %12 = arith.mulf %7, %7 : vector<16x128xf32>
    %cst_8 = arith.constant dense<0.000000e+00> : vector<16xf32>
    %13 = vector.multi_reduction <add>, %12, %cst_8 [1] : vector<16x128xf32> to vector<16xf32>
    %14 = vector.shape_cast %13 : vector<16xf32> to vector<16x1xf32>
    %cst_9 = arith.constant 1.562500e-02 : f32
    %15 = vector.broadcast %cst_9 : f32 to vector<16x1xf32>
    %16 = arith.mulf %14, %15 : vector<16x1xf32>
    %17 = arith.mulf %11, %11 : vector<16x1xf32>
    %18 = arith.subf %16, %17 : vector<16x1xf32>
    %cst_10 = arith.constant 0.000000e+00 : f32
    %19 = vector.broadcast %cst_10 : f32 to vector<16x1xf32>
    %20 = arith.maximumf %18, %19 : vector<16x1xf32>
    %21 = vector.broadcast %11 : vector<16x1xf32> to vector<16x128xf32>
    %22 = arith.subf %7, %21 : vector<16x128xf32>
    %cst_11 = arith.constant 9.99999974E-6 : f32
    %23 = vector.broadcast %cst_11 : f32 to vector<16x1xf32>
    %24 = arith.addf %20, %23 : vector<16x1xf32>
    %25 = math.rsqrt %24 : vector<16x1xf32>
    %26 = vector.broadcast %25 : vector<16x1xf32> to vector<16x128xf32>
    %27 = arith.mulf %22, %26 : vector<16x128xf32>
    %c1 = arith.constant 1 : index
    %c0_12 = arith.constant 0 : index
    %28 = vector.load %arg3[%c1, %c0_12] : memref<3x128xf32, #tpu.memory_space<vmem>>, vector<1x128xf32>
    %29 = vector.broadcast %28 : vector<1x128xf32> to vector<16x128xf32>
    %30 = arith.mulf %27, %29 : vector<16x128xf32>
    %c2 = arith.constant 2 : index
    %c0_13 = arith.constant 0 : index
    %31 = vector.load %arg3[%c2, %c0_13] : memref<3x128xf32, #tpu.memory_space<vmem>>, vector<1x128xf32>
    %32 = vector.broadcast %31 : vector<1x128xf32> to vector<16x128xf32>
    %33 = arith.addf %30, %32 : vector<16x128xf32>
    %34 = arith.truncf %33 : vector<16x128xf32> to vector<16x128xbf16>
    %c0_14 = arith.constant 0 : index
    %c0_15 = arith.constant 0 : index
    %35 = vector.load %arg4[%c0_14, %c0_15] : memref<128x128xbf16, #tpu.memory_space<vmem>>, vector<128x128xbf16>
    %cst_16 = arith.constant dense<0.000000e+00> : vector<16x128xf32>
    %36 = tpu.matmul %34, %35, %cst_16 {dimension_numbers = #tpu.dot_dimension_numbers<[1], [0], [0], [1], [0, 0, 1, 1], [], []>} : vector<16x128xbf16>, vector<128x128xbf16>, vector<16x128xf32> -> vector<16x128xf32>
    %c0_17 = arith.constant 0 : index
    %c0_18 = arith.constant 0 : index
    %37 = vector.load %arg5[%c0_17, %c0_18] : memref<1x128xf32, #tpu.memory_space<vmem>>, vector<1x128xf32>
    %38 = vector.broadcast %37 : vector<1x128xf32> to vector<16x128xf32>
    %39 = arith.addf %36, %38 : vector<16x128xf32>
    %c0_19 = arith.constant 0 : index
    %c0_20 = arith.constant 0 : index
    %40 = vector.load %arg6[%c0_19, %c0_20] : memref<16x128xf32, #tpu.memory_space<vmem>>, vector<16x128xf32>
    tpu.vector_store %arg6[%c0_19, %c0_20], %39 {strides = array<i32>} : memref<16x128xf32, #tpu.memory_space<vmem>>, vector<16x128xf32>,
    return
  }
  func.func @transform_0(%arg0: i32) -> (i32, i32) {
    %c0_i32 = arith.constant 0 : i32
    %c0_i32_0 = arith.constant 0 : i32
    return %arg0, %c0_i32 : i32, i32
  }
  func.func @transform_1(%arg0: i32) -> (i32, i32) {
    %c0_i32 = arith.constant 0 : i32
    %c0_i32_0 = arith.constant 0 : i32
    %c0_i32_1 = arith.constant 0 : i32
    return %c0_i32, %c0_i32_0 : i32, i32
  }
  func.func @transform_2(%arg0: i32) -> (i32, i32) {
    %c0_i32 = arith.constant 0 : i32
    %c0_i32_0 = arith.constant 0 : i32
    %c0_i32_1 = arith.constant 0 : i32
    return %c0_i32, %c0_i32_0 : i32, i32
  }
  func.func @transform_3(%arg0: i32) -> (i32, i32) {
    %c0_i32 = arith.constant 0 : i32
    %c0_i32_0 = arith.constant 0 : i32
    %c0_i32_1 = arith.constant 0 : i32
    return %c0_i32, %c0_i32_0 : i32, i32
  }
  func.func @transform_4(%arg0: i32) -> (i32, i32) {
    %c0_i32 = arith.constant 0 : i32
    %c0_i32_0 = arith.constant 0 : i32
    %c0_i32_1 = arith.constant 0 : i32
    return %c0_i32, %c0_i32_0 : i32, i32
  }
  func.func @transform_5(%arg0: i32) -> (i32, i32) {
    %c0_i32 = arith.constant 0 : i32
    %c0_i32_0 = arith.constant 0 : i32
    return %arg0, %c0_i32 : i32, i32
  }
}

module attributes {stable_mosaic.version = 11 : i64} {
  func.func @_fused_kernel(%arg0: i32, %arg1: memref<16x128xbf16, #tpu.memory_space<vmem>>, %arg2: memref<128x128xbf16, #tpu.memory_space<vmem>>, %arg3: memref<3x128xf32, #tpu.memory_space<vmem>>, %arg4: memref<128x128xbf16, #tpu.memory_space<vmem>>, %arg5: memref<1x128xf32, #tpu.memory_space<vmem>>, %arg6: memref<16x128xf32, #tpu.memory_space<vmem>>) attributes {dimension_semantics = [#tpu.dimension_semantics<parallel>], iteration_bounds = array<i64: 2>, scalar_prefetch = 0 : i64, scratch_operands = 0 : i64, tpu.core_type = #tpu.core_type<tc>, window_params = [{transform_indices = @transform_0, window_bounds = array<i64: 16, 128>}, {pipeline_mode = #tpu.pipeline_mode<synchronous>, transform_indices = @transform_1, window_bounds = array<i64: 128, 128>}, {pipeline_mode = #tpu.pipeline_mode<synchronous>, transform_indices = @transform_2, window_bounds = array<i64: 3, 128>}, {pipeline_mode = #tpu.pipeline_mode<synchronous>, transform_indices = @transform_3, window_bounds = array<i64: 128, 128>}, {pipeline_mode = #tpu.pipeline_mode<synchronous>, transform_indices = @transform_4, window_bounds = array<i64: 1, 128>}, {transform_indices = @transform_5, window_bounds = array<i64: 16, 128>}]} {
    %c0 = arith.constant 0 : index
    %c0_0 = arith.constant 0 : index
    %0 = vector.load %arg1[%c0, %c0_0] : memref<16x128xbf16, #tpu.memory_space<vmem>>, vector<16x128xbf16>
    %c0_1 = arith.constant 0 : index
    %c0_2 = arith.constant 0 : index
    %1 = vector.load %arg2[%c0_1, %c0_2] : memref<128x128xbf16, #tpu.memory_space<vmem>>, vector<128x128xbf16>
    %cst = arith.constant dense<0.000000e+00> : vector<16x128xf32>
    %2 = tpu.matmul %0, %1, %cst {dimension_numbers = #tpu.dot_dimension_numbers<[1], [0], [0], [1], [0, 0, 1, 1], [], []>} : vector<16x128xbf16>, vector<128x128xbf16>, vector<16x128xf32> -> vector<16x128xf32>
    %c0_3 = arith.constant 0 : index
    %c0_4 = arith.constant 0 : index
    %3 = vector.load %arg3[%c0_3, %c0_4] : memref<3x128xf32, #tpu.memory_space<vmem>>, vector<1x128xf32>
    %4 = vector.broadcast %3 : vector<1x128xf32> to vector<16x128xf32>
    %5 = arith.addf %2, %4 : vector<16x128xf32>
    %cst_5 = arith.constant 0.000000e+00 : f32
    %6 = vector.broadcast %cst_5 : f32 to vector<16x128xf32>
    %7 = arith.maximumf %5, %6 : vector<16x128xf32>
    %cst_6 = arith.constant dense<0.000000e+00> : vector<16xf32>
    %8 = vector.multi_reduction <add>, %7, %cst_6 [1] : vector<16x128xf32> to vector<16xf32>
    %9 = vector.shape_cast %8 : vector<16xf32> to vector<16x1xf32>
    %cst_7 = arith.constant 1.562500e-02 : f32
    %10 = vector.broadcast %cst_7 : f32 to vector<16x1xf32>
    %11 = arith.mulf %9, %10 : vector<16x1xf32>
    %12 = arith.mulf %7, %7 : vector<16x128xf32>
    %cst_8 = arith.constant dense<0.000000e+00> : vector<16xf32>
    %13 = vector.multi_reduction <add>, %12, %cst_8 [1] : vector<16x128xf32> to vector<16xf32>
    %14 = vector.shape_cast %13 : vector<16xf32> to vector<16x1xf32>
    %cst_9 = arith.constant 1.562500e-02 : f32
    %15 = vector.broadcast %cst_9 : f32 to vector<16x1xf32>
    %16 = arith.mulf %14, %15 : vector<16x1xf32>
    %17 = arith.mulf %11, %11 : vector<16x1xf32>
    %18 = arith.subf %16, %17 : vector<16x1xf32>
    %cst_10 = arith.constant 0.000000e+00 : f32
    %19 = vector.broadcast %cst_10 : f32 to vector<16x1xf32>
    %20 = arith.maximumf %18, %19 : vector<16x1xf32>
    %21 = vector.broadcast %11 : vector<16x1xf32> to vector<16x128xf32>
    %22 = arith.subf %7, %21 : vector<16x128xf32>
    %cst_11 = arith.constant 9.99999974E-6 : f32
    %23 = vector.broadcast %cst_11 : f32 to vector<16x1xf32>
    %24 = arith.addf %20, %23 : vector<16x1xf32>
    %25 = math.rsqrt %24 : vector<16x1xf32>
    %26 = vector.broadcast %25 : vector<16x1xf32> to vector<16x128xf32>
    %27 = arith.mulf %22, %26 : vector<16x128xf32>
    %c1 = arith.constant 1 : index
    %c0_12 = arith.constant 0 : index
    %28 = vector.load %arg3[%c1, %c0_12] : memref<3x128xf32, #tpu.memory_space<vmem>>, vector<1x128xf32>
    %29 = vector.broadcast %28 : vector<1x128xf32> to vector<16x128xf32>
    %30 = arith.mulf %27, %29 : vector<16x128xf32>
    %c2 = arith.constant 2 : index
    %c0_13 = arith.constant 0 : index
    %31 = vector.load %arg3[%c2, %c0_13] : memref<3x128xf32, #tpu.memory_space<vmem>>, vector<1x128xf32>
    %32 = vector.broadcast %31 : vector<1x128xf32> to vector<16x128xf32>
    %33 = arith.addf %30, %32 : vector<16x128xf32>
    %34 = arith.truncf %33 : vector<16x128xf32> to vector<16x128xbf16>
    %c0_14 = arith.constant 0 : index
    %c0_15 = arith.constant 0 : index
    %35 = vector.load %arg4[%c0_14, %c0_15] : memref<128x128xbf16, #tpu.memory_space<vmem>>, vector<128x128xbf16>
    %cst_16 = arith.constant dense<0.000000e+00> : vector<16x128xf32>
    %36 = tpu.matmul %34, %35, %cst_16 {dimension_numbers = #tpu.dot_dimension_numbers<[1], [0], [0], [1], [0, 0, 1, 1], [], []>} : vector<16x128xbf16>, vector<128x128xbf16>, vector<16x128xf32> -> vector<16x128xf32>
    %c0_17 = arith.constant 0 : index
    %c0_18 = arith.constant 0 : index
    %37 = vector.load %arg5[%c0_17, %c0_18] : memref<1x128xf32, #tpu.memory_space<vmem>>, vector<1x128xf32>
    %38 = vector.broadcast %37 : vector<1x128xf32> to vector<16x128xf32>
    %39 = arith.addf %36, %38 : vector<16x128xf32>
    %c0_19 = arith.constant 0 : index
    %c0_20 = arith.constant 0 : index
    %40 = vector.load %arg6[%c0_19, %c0_20] : memref<16x128xf32, #tpu.memory_space<vmem>>, vector<16x128xf32>
    tpu.vector_store %arg6[%c0_19, %c0_20], %39 {strides = array<i32>} : memref<16x128xf32, #tpu.memory_space<vmem>>, vector<16x128xf32>,
    return
  }
  func.func @transform_0(%arg0: i32) -> (i32, i32) {
    %c0_i32 = arith.constant 0 : i32
    %c0_i32_0 = arith.constant 0 : i32
    return %arg0, %c0_i32 : i32, i32
  }
  func.func @transform_1(%arg0: i32) -> (i32, i32) {
    %c0_i32 = arith.constant 0 : i32
    %c0_i32_0 = arith.constant 0 : i32
    %c0_i32_1 = arith.constant 0 : i32
    return %c0_i32, %c0_i32_0 : i32, i32
  }
  func.func @transform_2(%arg0: i32) -> (i32, i32) {
    %c0_i32 = arith.constant 0 : i32
    %c0_i32_0 = arith.constant 0 : i32
    %c0_i32_1 = arith.constant 0 : i32
    return %c0_i32, %c0_i32_0 : i32, i32
  }
  func.func @transform_3(%arg0: i32) -> (i32, i32) {
    %c0_i32 = arith.constant 0 : i32
    %c0_i32_0 = arith.constant 0 : i32
    %c0_i32_1 = arith.constant 0 : i32
    return %c0_i32, %c0_i32_0 : i32, i32
  }
  func.func @transform_4(%arg0: i32) -> (i32, i32) {
    %c0_i32 = arith.constant 0 : i32
    %c0_i32_0 = arith.constant 0 : i32
    %c0_i32_1 = arith.constant 0 : i32
    return %c0_i32, %c0_i32_0 : i32, i32
  }
  func.func @transform_5(%arg0: i32) -> (i32, i32) {
    %c0_i32 = arith.constant 0 : i32
    %c0_i32_0 = arith.constant 0 : i32
    return %arg0, %c0_i32 : i32, i32
  }
}

</mosaic_0001>

<bundles_post_ra>
// kernel: tpu_custom_call.1
= control target key start
LH: loop header
LB: loop body
LE: loop exit
PB: predicated region body
PF: predicated region fallthrough
CT: control target
= control target key end

     0   :  { %10 = vsyncpa [#allocation3], 0  ;;  %s1487_s0 = inlined_call_operand.hbm [shape: bf16[32,128], index: 0, kind: input, shape index: {}]   ;;  %s1488_s1 = inlined_call_operand.hbm [shape: bf16[128,128], index: 1, kind: input, shape index: {}]   ;;  %s1489_s2 = inlined_call_operand.hbm [shape: f32[3,128], index: 2, kind: input, shape index: {}]   ;;  %s1490_s3 = inlined_call_operand.hbm [shape: bf16[128,128], index: 3, kind: input, shape index: {}]   ;;  %s1491_s4 = inlined_call_operand.hbm [shape: f32[1,128], index: 4, kind: input, shape index: {}]   ;;  %s1492_s5 = inlined_call_operand.hbm [shape: f32[32,128], index: 5, kind: output, shape index: {}]  }
   0x1   :  { %12 = vsyncpa [#allocation3 + $0x1], 0 }
   0x2   :  { %13 = vsyncpa [#allocation6], 0 }
   0x3   :  { %14 = vsyncpa [#allocation9], 0 }
   0x4   :  { %15 = vsyncpa [#allocation4], 0 }
   0x5   :  { %17 = vsyncpa [#allocation4 + $0x1], 0  ;;  %s1179_s18 = smov 0   ;;  %s1181_s19 = smov 0  }
   0x6   :  { %s1183_s20 = smov 0   ;;  %s1185_s21 = smov 0  }
   0x7 LB: > { %s1200_s22 = sadd.s32 4294967295, %s1135_s21   ;;  %s702_s23 = sadd.s32 4294967294, %s1135_s21   ;;  %s1135_s21 = sphi %s1185_s21, %s1515_s21   ;;  %s1131_s20 = sphi %s1183_s20, %s1514_s20   ;;  %s1127_s19 = sphi %s1181_s19, %s1513_s19   ;;  %s1123_s18 = sphi %s1179_s18, %s1512_s18  }
   0x8   : > { %p43_p0 = scmp.ne.s32.totalorder %s1127_s19, %s1123_s18  ;;  %p1493_p1 = scmp.eq.s32.totalorder %s1200_s22, 0 }
   0x9   : > { %p157_p3 = scmp.eq.s32.totalorder %s702_s23, 1  ;;  %p703_p5 = scmp.ge.s32.totalorder %s1135_s21, 1 }
   0xa   : > { %p1209_p4 = por %p1493_p1, %p43_p0  ;;  %p164_p7 = scmp.lt.s32.totalorder %s1135_s21, 3 }
   0xb   : > { %p1214_p6 = por %p157_p3, %p43_p0  ;;  %s1137_s27 = smov [#allocation5]  }
   0xc   : > { %s1496_s24 = scalar_select %p1209_p4, 1, 0 }
   0xd   : > { %s1497_s25 = scalar_select %p1214_p6, 1, 0 }
   0xe   : > { %p1219_p8 = pnand %p703_p5, %p164_p7  ;;  %s176_s28 = sshll.u32 %s1137_s27, 4  ;;  %s1223_s28 = int_to_ptr.vmem [resolvable:$true] %s176_s28 }
   0xf   : > { %s1138_s30 = smov [#allocation8]   ;;  %s1139_s7 = smov [#allocation7]  }
  0x10   : > { %s1498_s26 = scalar_select %p1219_p8, 1, 0 }
  0x11   : > { %p825_p9 = pneg %p1219_p8  ;;  %s200_s6 = sshll.u32 %s1138_s30, 4  ;;  %s1234_s6 = int_to_ptr.vmem [resolvable:$true] %s200_s6 }
  0x12   : > { %s1236_s8 = sshll.u32 %s1139_s7, 4  ;;  %s919_s11 = scalar_lea.hbm %s1488_s1, 1024  ;;  %s191_s8 = int_to_ptr.vmem [resolvable:$true] %s1236_s8 }
  0x13   : > { %p1230_p11 = pnand %p825_p9, %p1493_p1  ;;  %p920_p12 = scmp.ne.s32.totalorder %s1488_s1, %s919_s11 }
  0x14   : > { %p926_p5 = scmp.lt.u32.totalorder %s919_s11, %s1488_s1 }
  0x15   : > { %p1246_p13 = pneg %p1230_p11 }
  0x17   : > { %p922_p0 = pnand %p1246_p13, %p920_p12 }
  0x19   : > { %p923_p3 = pneg %p922_p0 }
  0x1b   : > { %p928_p7 = pnand %p926_p5, %p923_p3 }
  0x1d   : > { %931 = shalt.err (!%p928_p7)
}
  0x1e   : > { %s932_s17 = scalar_lea.vmem %s1223_s28, 1024  ;;  %p940_p2 = scmp.lt.s32.totalorder %s1223_s28, %s1223_s28 }
  0x1f   : > { %p933_p9 = scmp.ne.s32.totalorder %s1223_s28, %s932_s17  ;;  %p941_p6 = scmp.lt.s32.totalorder %s932_s17, %s932_s17 }
  0x21   : > { %p935_p10 = pnand %p933_p9, %p1246_p13  ;;  %p942_p12 = por %p941_p6, %p940_p2 }
  0x23   : > { %p936_p1 = pneg %p935_p10 }
  0x25   : > { %p943_p0 = pnand %p942_p12, %p936_p1 }
  0x27   : > { %946 = shalt.err (!%p943_p0)
}
  0x28   : > { %s1140_s23 = smov 64   ;;  %s1141_s27 = smov 4  }
  0x29   : > { %828 = dma.hbm_to_vmem [thread:$0]  (!%p1230_p11), %s1488_s1, 1024, %s1223_s28, [#allocation6], %s1140_s23, %s1140_s23, %s1141_s27  }
  0x2a   : > { %s947_s11 = scalar_lea.hbm %s1490_s3, 1024 }
  0x2b   : > { %p948_p1 = scmp.ne.s32.totalorder %s1490_s3, %s947_s11  ;;  %p954_p10 = scmp.lt.u32.totalorder %s947_s11, %s1490_s3 }
  0x2d   : > { %p950_p2 = pnand %p948_p1, %p1246_p13 }
  0x2f   : > { %p951_p6 = pneg %p950_p2 }
  0x31   : > { %p956_p3 = pnand %p954_p10, %p951_p6 }
  0x33   : > { %959 = shalt.err (!%p956_p3)
}
  0x34   : > { %s960_s28 = scalar_lea.vmem %s1234_s6, 1024  ;;  %p968_p12 = scmp.lt.s32.totalorder %s1234_s6, %s1234_s6 }
  0x35   : > { %p961_p5 = scmp.ne.s32.totalorder %s1234_s6, %s960_s28  ;;  %p969_p0 = scmp.lt.s32.totalorder %s960_s28, %s960_s28 }
  0x37   : > { %p963_p7 = pnand %p961_p5, %p1246_p13  ;;  %p970_p1 = por %p969_p0, %p968_p12 }
  0x39   : > { %p964_p9 = pneg %p963_p7 }
  0x3b   : > { %p971_p2 = pnand %p970_p1, %p964_p9 }
  0x3d   : > { %974 = shalt.err (!%p971_p2)
}
  0x3e   : > { %834 = dma.hbm_to_vmem [thread:$0]  (!%p1230_p11), %s1490_s3, 1024, %s1234_s6, [#allocation9], %s1140_s23, %s1140_s23, %s1141_s27  }
  0x3f   : > { %s975_s10 = scalar_lea.hbm %s1489_s2, 64 }
  0x40   : > { %p976_p6 = scmp.ne.s32.totalorder %s1489_s2, %s975_s10  ;;  %p982_p5 = scmp.lt.u32.totalorder %s975_s10, %s1489_s2 }
  0x42   : > { %p978_p10 = pnand %p976_p6, %p1246_p13 }
  0x44   : > { %p979_p3 = pneg %p978_p10 }
  0x46   : > { %p984_p7 = pnand %p982_p5, %p979_p3 }
  0x48   : > { %987 = shalt.err (!%p984_p7)
}
  0x49   : > { %s988_s16 = scalar_lea.vmem %s191_s8, 64  ;;  %p996_p1 = scmp.lt.s32.totalorder %s191_s8, %s191_s8 }
  0x4a   : > { %p989_p9 = scmp.ne.s32.totalorder %s191_s8, %s988_s16  ;;  %p997_p2 = scmp.lt.s32.totalorder %s988_s16, %s988_s16 }
  0x4c   : > { %p991_p12 = pnand %p989_p9, %p1246_p13  ;;  %p998_p4 = por %p997_p2, %p996_p1 }
  0x4e   : > { %p992_p0 = pneg %p991_p12 }
  0x50   : > { %p999_p8 = pnand %p998_p4, %p992_p0 }
  0x52   : > { %1002 = shalt.err (!%p999_p8)
}
  0x53   : > { %831 = dma.hbm_to_vmem [thread:$0]  (!%p1230_p11), %s1489_s2, 64, %s191_s8, [#allocation6]  }
  0x54   : > { %s1142_s17 = smov [#allocation10]   ;;  %s1003_s10 = scalar_lea.hbm %s1491_s4, 16 }
  0x55   : > { %s214_s30 = sshll.u32 %s1142_s17, 4  ;;  %p1004_p6 = scmp.ne.s32.totalorder %s1491_s4, %s1003_s10  ;;  %s215_s30 = int_to_ptr.vmem [resolvable:$true] %s214_s30 }
  0x56   : > { %p1010_p10 = scmp.lt.u32.totalorder %s1003_s10, %s1491_s4 }
  0x57   : > { %p1006_p4 = pnand %p1004_p6, %p1246_p13 }
  0x59   : > { %p1007_p8 = pneg %p1006_p4 }
  0x5b   : > { %p1012_p3 = pnand %p1010_p10, %p1007_p8 }
  0x5d   : > { %1015 = shalt.err (!%p1012_p3)
}
  0x5e   : > { %s1016_s8 = scalar_lea.vmem %s215_s30, 16  ;;  %s1023_s16 = scalar_lea.vmem %s215_s30, 32 }
  0x5f   : > { %p1017_p5 = scmp.ne.s32.totalorder %s215_s30, %s1016_s8  ;;  %p1024_p12 = scmp.lt.s32.totalorder %s215_s30, %s215_s30 }
  0x60   : > { %p1025_p0 = scmp.lt.s32.totalorder %s1023_s16, %s1016_s8 }
  0x61   : > { %p1019_p7 = pnand %p1017_p5, %p1246_p13 }
  0x62   : > { %p1026_p1 = por %p1025_p0, %p1024_p12 }
  0x63   : > { %p1020_p9 = pneg %p1019_p7 }
  0x65   : > { %p1027_p2 = pnand %p1026_p1, %p1020_p9 }
  0x67   : > { %1030 = shalt.err (!%p1027_p2)
}
  0x68   : > { %837 = dma.hbm_to_vmem [thread:$0]  (!%p1230_p11), %s1491_s4, 16, %s215_s30, [#allocation9]  }
  0x69   : > { %s1334_s14 = sadd.s32 1, %s1135_s21   ;;  %s30_s17 = sadd.s32 1, %s1131_s20 }
  0x6a   : > { %s27_s29 = ssub.s32 %s1135_s21, %s1334_s14  ;;  %p37_p13 = scmp.ne.s32.totalorder %s1131_s20, %s1127_s19 }
  0x6b   : > { %p28_p6 = scmp.eq.s32.totalorder %s27_s29, 0  ;;  %p38_p4 = scmp.eq.s32.totalorder %s1135_s21, 0 }
  0x6c   : > { %p1501_p8 = scmp.eq.s32.totalorder %s1200_s22, 1  ;;  %p850_p3 = scmp.lt.s32.totalorder %s1135_s21, 2 }
  0x6d   : > { %s1350_s9 = scalar_select %p28_p6, %s1131_s20, %s30_s17  }
  0x6e   : > { %p1344_p10 = por %p1501_p8, %p37_p13  ;;  %p39_p5 = por %p38_p4, %p37_p13 }
  0x6f   : > { %s225_s10 = sand.u32 1, %s1131_s20   ;;  %s745_s30 = sshll.u32 %s1135_s21, 7 }
  0x70   : > { %s709_s11 = sshll.u32 %s225_s10, 3  ;;  %s1357_s15 = scalar_lea.hbm %s1487_s0, %s745_s30 }
  0x71   : > { %s229_s8 = scalar_lea.vmem [#allocation2], %s709_s11  ;;  %p1361_p11 = pnand %p850_p3, %p39_p5 }
  0x72   : > { %s236_s16 = sshll.u32 %s229_s8, 4  ;;  %s1365_s28 = scalar_lea.sflag [#allocation3], %s225_s10  ;;  %s1359_s16 = int_to_ptr.vmem [resolvable:$true] %s236_s16 }
  0x73   : > { %s1031_s17 = scalar_lea.hbm %s1357_s15, 128  ;;  %p1033_p9 = pneg %p1361_p11 }
  0x74   : > { %p1032_p7 = scmp.ne.s32.totalorder %s1357_s15, %s1031_s17  ;;  %s1036_s30 = scalar_lea.hbm %s1487_s0, 256 }
  0x75   : > { %p1037_p1 = scmp.lt.u32.totalorder %s1357_s15, %s1487_s0  ;;  %p1038_p2 = scmp.lt.u32.totalorder %s1036_s30, %s1031_s17 }
  0x76   : > { %p1034_p12 = pnand %p1033_p9, %p1032_p7  ;;  %p1040_p6 = scmp.lt.u32.totalorder %s1031_s17, %s1357_s15 }
  0x77   : > { %p1039_p13 = por %p1038_p2, %p1037_p1 }
  0x78   : > { %p1035_p0 = pneg %p1034_p12 }
  0x79   : > { %p1041_p4 = por %p1040_p6, %p1039_p13 }
  0x7b   : > { %p1042_p8 = pnand %p1041_p4, %p1035_p0 }
  0x7d   : > { %1045 = shalt.err (!%p1042_p8)
}
  0x7e   : > { %s1046_s10 = scalar_lea.vmem %s1359_s16, 128  ;;  %s1143_s8 = smov [#allocation2]  }
  0x7f   : > { %p1047_p3 = scmp.ne.s32.totalorder %s1359_s16, %s1046_s10  ;;  %s1051_s29 = sshll.u32 %s1143_s8, 4  ;;  %s1052_s29 = int_to_ptr.vmem [resolvable:$false] %s1051_s29 }
  0x80   : > { %s1053_s11 = scalar_lea.vmem %s1052_s29, 256  ;;  %p1054_p12 = scmp.lt.s32.totalorder %s1359_s16, %s1052_s29 }
  0x81   : > { %p1049_p5 = pnand %p1047_p3, %p1033_p9  ;;  %p1055_p1 = scmp.lt.s32.totalorder %s1053_s11, %s1046_s10 }
  0x83   : > { %p1050_p7 = pneg %p1049_p5  ;;  %p1056_p2 = por %p1055_p1, %p1054_p12 }
  0x85   : > { %p1057_p13 = pnand %p1056_p2, %p1050_p7 }
  0x87   : > { %1060 = shalt.err (!%p1057_p13)
}
  0x88   : > { %841 = dma.hbm_to_vmem [thread:$0]  (!%p1361_p11), %s1357_s15, 128, %s1359_s16, %s1365_s28, %s1140_s23, %s1140_s23, %s1141_s27  }
  0x89   : > { %p1504_p9 = scmp.ne.s32.totalorder %s1498_s26, 0 }
  0x8a   : > { %s1399_s17 = sand.u32 (!%p1504_p9), 1, %s1127_s19   ;;  %p1505_p0 = scmp.ne.s32.totalorder (!%p1504_p9), %s1496_s24, 0 }
  0x8b   : > { %248 = sbr.rel (%p1504_p9) target bundleno = 810 (0x32a), region = 40  ;;  %s713_s30 = sshll.u32 (!%p1504_p9), %s1399_s17, 3 }
  0x8c   : > { %s251_s12 = scalar_lea.sflag (!%p1504_p9), [#allocation3], %s1399_s17  ;;  %s1403_s13 = scalar_lea.vmem (!%p1504_p9), [#allocation2], %s713_s30 }
  0x92   : > { %1106 = dma.done.wait (%p1505_p0), %s251_s12, 128  }
  0x93   : > { %1108 = vsyncadd (%p1505_p0), %s251_s12, 4294967168  ;;  %p1506_p11 = scmp.eq.s32.totalorder %s1200_s22, 0 }
  0x95   : > { %1110 = dma.done.wait (%p1506_p11), [#allocation6], 1088   ;;  %p1507_p6 = pmov %p1506_p11 }
  0x97   : > { %1112 = vsyncadd (%p1507_p6), [#allocation6], 4294966208  ;;  %p1508_p4 = pmov %p1507_p6 }
  0x99   : > { %1114 = dma.done.wait (%p1508_p4), [#allocation9], 1040   ;;  %p1509_p8 = pmov %p1508_p4 }
  0x9a   : > { %v1144_v0 = vmov 0.0   ;;  %vm1145_vm0 = vmmov 0   ;;  %v898_v1 = vld [vmem:[#allocation5] sm:$0xff]   ;;  %v899_v2 = vld [vmem:[#allocation5 + $0x8] sm:$0xff]   ;;  %v900_v3 = vld [vmem:[#allocation5 + $0x10] sm:$0xff]   ;;  %s718_s24 = sshll.u32 %s1399_s17, 4 }
  0x9b   : > { %1116 = vsyncadd (%p1509_p8), [#allocation9], 4294966256  ;;  %765 = vmatprep.subr.bf16.mxu0 %v1144_v0  ;;  %781 = vmatprep.mubr.msk.bf16.mxu0 %vm1145_vm0, %v1144_v0  ;;  %v901_v4 = vld [vmem:[#allocation5 + $0x18] sm:$0xff]   ;;  %v902_v5 = vld [vmem:[#allocation5 + $0x20] sm:$0xff]   ;;  %s296_s26 = scalar_lea.vmem [#allocation11], %s718_s24  ;;  %s746_s27 = sshll.u32 %s1200_s22, 8 }
  0x9c   : > { %785 = vmatprep.subr.bf16.mxu1 %v1144_v0  ;;  %801 = vmatprep.mubr.msk.bf16.mxu1 %vm1145_vm0, %v1144_v0  ;;  %v903_v6 = vld [vmem:[#allocation5 + $0x28] sm:$0xff]   ;;  %v904_v7 = vld [vmem:[#allocation5 + $0x30] sm:$0xff]   ;;  %v905_v8 = vld [vmem:[#allocation5 + $0x38] sm:$0xff]   ;;  %s591_s23 = sshll.u32 %s296_s26, 4  ;;  %s1443_s6 = scalar_lea.hbm %s1492_s5, %s746_s27  ;;  %s1438_s23 = int_to_ptr.vmem [resolvable:$true] %s591_s23 }
  0x9d   : > { %766 = vmatpush3.bf16.msra.mxu0 %v898_v1  ;;  %v906_v9 = vld [vmem:[%s1403_s13] sm:$0xff]   ;;  %v719_v10 = vld [vmem:[#allocation7] ss:$0 sm:$0xff]  ;;  %v907_v21 = vld [vmem:[#allocation8] sm:$0xff]   ;;  %s578_s28 = scalar_lea.sflag [#allocation4], %s1399_s17  ;;  %s1061_s22 = scalar_lea.vmem %s1438_s23, 256 }
  0x9e   : > { %767 = vmatprep.subr.bf16.mxu0 %v1144_v0  ;;  %786 = vmatpush3.bf16.msra.mxu1 %v907_v21  ;;  %v908_v22 = vld [vmem:[#allocation8 + $0x8] sm:$0xff]   ;;  %v909_v23 = vld [vmem:[#allocation8 + $0x10] sm:$0xff]   ;;  %v910_v24 = vld [vmem:[#allocation8 + $0x18] sm:$0xff]   ;;  %p1062_p3 = scmp.ne.s32.totalorder %s1438_s23, %s1061_s22  ;;  %s1146_s10 = smov [#allocation11]  }
  0x9f   : > { %787 = vmatprep.subr.bf16.mxu1 %v1144_v0  ;;  %v911_v25 = vld [vmem:[#allocation8 + $0x20] sm:$0xff]   ;;  %v912_v26 = vld [vmem:[#allocation8 + $0x28] sm:$0xff]   ;;  %v913_v27 = vld [vmem:[#allocation8 + $0x30] sm:$0xff]   ;;  %s1065_s8 = sshll.u32 %s1146_s10, 4  ;;  %s1066_s8 = int_to_ptr.vmem [resolvable:$false] %s1065_s8 }
  0xa0   : > { %v914_v28 = vld [vmem:[#allocation8 + $0x38] sm:$0xff]   ;;  %v731_v58 = vld [vmem:[#allocation10] ss:$0 sm:$0xff]  ;;  %p1063_p5 = pnand %p1062_p3, %p1344_p10  ;;  %s1067_s29 = scalar_lea.vmem %s1066_s8, 512 }
  0xa1   : > { %768 = vmatpush3.bf16.msra.mxu0 %v899_v2  ;;  %v729_v48 = vld [vmem:[#allocation7 + $0x1] ss:$0 sm:$0xff]  ;;  %v730_v53 = vld [vmem:[#allocation7 + $0x2] ss:$0 sm:$0xff]  ;;  %p1068_p12 = scmp.lt.s32.totalorder %s1438_s23, %s1066_s8  ;;  %p1069_p1 = scmp.lt.s32.totalorder %s1067_s29, %s1061_s22 }
  0xa2   : > { %769 = vmatprep.subr.bf16.mxu0 %v1144_v0  ;;  %788 = vmatpush3.bf16.msra.mxu1 %v908_v22  ;;  %p1064_p7 = pneg %p1063_p5 }
  0xa3   : > { %789 = vmatprep.subr.bf16.mxu1 %v1144_v0  ;;  %p1070_p2 = por %p1069_p1, %p1068_p12 }
  0xa5   : > { %770 = vmatpush3.bf16.msra.mxu0 %v900_v3  ;;  %p1071_p13 = pnand %p1070_p2, %p1064_p7 }
  0xa6   : > { %771 = vmatprep.subr.bf16.mxu0 %v1144_v0  ;;  %790 = vmatpush3.bf16.msra.mxu1 %v909_v23 }
  0xa7   : > { %791 = vmatprep.subr.bf16.mxu1 %v1144_v0 }
  0xa9   : > { %772 = vmatpush3.bf16.msra.mxu0 %v901_v4 }
  0xaa   : > { %773 = vmatprep.subr.bf16.mxu0 %v1144_v0  ;;  %792 = vmatpush3.bf16.msra.mxu1 %v910_v24 }
  0xab   : > { %793 = vmatprep.subr.bf16.mxu1 %v1144_v0 }
  0xad   : > { %774 = vmatpush3.bf16.msra.mxu0 %v902_v5 }
  0xae   : > { %775 = vmatprep.subr.bf16.mxu0 %v1144_v0  ;;  %794 = vmatpush3.bf16.msra.mxu1 %v911_v25 }
  0xaf   : > { %795 = vmatprep.subr.bf16.mxu1 %v1144_v0 }
  0xb1   : > { %776 = vmatpush3.bf16.msra.mxu0 %v903_v6 }
  0xb2   : > { %777 = vmatprep.subr.bf16.mxu0 %v1144_v0  ;;  %796 = vmatpush3.bf16.msra.mxu1 %v912_v26 }
  0xb3   : > { %797 = vmatprep.subr.bf16.mxu1 %v1144_v0 }
  0xb5   : > { %778 = vmatpush3.bf16.msra.mxu0 %v904_v7 }
  0xb6   : > { %779 = vmatprep.subr.bf16.mxu0 %v1144_v0  ;;  %798 = vmatpush3.bf16.msra.mxu1 %v913_v27 }
  0xb7   : > { %799 = vmatprep.subr.bf16.mxu1 %v1144_v0 }
  0xb9   : > { %780 = vmatpush3.bf16.msra.mxu0 %v905_v8 }
  0xba   : > { %800 = vmatpush3.bf16.msra.mxu1 %v914_v28 }
  0xbc   : > { %782 = vmatmul.mubr.bf16.vlgmr.msra.gmra.mrb[0].mxu0 %v906_v9 }
 0x18f   : > { %v411_v11 = vpop.f32.mrb[0].mxu0 }
 0x190   : > { %v412_v12 = vadd.f32 %v719_v10, %v411_v11  ;;  %v783_v13 = vpop.f32.mrb[1].mxu0 }
 0x191   : > { %v414_v14 = vpop.f32.mrb[2].mxu0 }
 0x192   : > { %v418_v15 = vmax.f32 %v412_v12, 0.0  ;;  %v415_v16 = vadd.f32 %v719_v10, %v414_v14  ;;  %v784_v17 = vpop.f32.mrb[3].mxu0 }
 0x194   : > { %v419_v18 = vmax.f32 %v415_v16, 0.0  ;;  %420 = vadd.xlane.f32.xlu0 %v418_v15  ;;  %v426_v19 = vmul.f32 %v418_v15, %v418_v15 }
 0x196   : > { %428 = vadd.xlane.f32.xlu1 %v426_v19  ;;  %v427_v20 = vmul.f32 %v419_v18, %v419_v18 }
 0x198   : > { %422 = vadd.xlane.f32.xlu0 %v419_v18 }
 0x19a   : > { %430 = vadd.xlane.f32.xlu1 %v427_v20 }
 0x221   : > { %v421_v29 = vpop.xlane.xlu0 %420 }
 0x222   : > { %v424_v30 = vmul.f32 0.015625, %v421_v29 }
 0x223   : > { %v429_v31 = vpop.xlane.xlu1 %428 }
 0x224   : > { %v434_v32 = vmul.f32 %v424_v30, %v424_v30  ;;  %v432_v33 = vmul.f32 0.015625, %v429_v31  ;;  %v440_v45 = vsub.f32 %v418_v15, %v424_v30 }
 0x225   : > { %v423_v34 = vpop.xlane.xlu0 %422 }
 0x226   : > { %v436_v35 = vsub.f32 %v432_v33, %v434_v32  ;;  %v425_v36 = vmul.f32 0.015625, %v423_v34 }
 0x227   : > { %v431_v37 = vpop.xlane.xlu1 %430 }
 0x228   : > { %v438_v38 = vmax.f32 %v436_v35, 0.0  ;;  %v435_v39 = vmul.f32 %v425_v36, %v425_v36  ;;  %v433_v40 = vmul.f32 0.015625, %v431_v37  ;;  %v441_v49 = vsub.f32 %v419_v18, %v425_v36 }
 0x22a   : > { %v442_v41 = vadd.f32 1e-05, %v438_v38  ;;  %v437_v42 = vsub.f32 %v433_v40, %v435_v39 }
 0x22c   : > { %915 = vrsqrt.f32 %v442_v41  ;;  %v439_v43 = vmax.f32 %v437_v42, 0.0 }
 0x22e   : > { %v443_v44 = vadd.f32 1e-05, %v439_v43 }
 0x230   : > { %917 = vrsqrt.f32 %v443_v44 }
 0x236   : > { %v916_v46 = vpop.eup %915 }
 0x237   : > { %v446_v47 = vmul.f32 %v916_v46, %v440_v45 }
 0x239   : > { %v453_v52 = vmul.f32 %v729_v48, %v446_v47 }
 0x23a   : > { %v918_v50 = vpop.eup %917 }
 0x23b   : > { %v447_v51 = vmul.f32 %v918_v50, %v441_v49  ;;  %v460_v55 = vadd.f32 %v730_v53, %v453_v52 }
 0x23d   : > { %v454_v54 = vmul.f32 %v729_v48, %v447_v51 }
 0x23f   : > { %v461_v56 = vadd.f32 %v730_v53, %v454_v54 }
 0x241   : > { %v462_v57 = vpack.c.bf16 %v461_v56, %v460_v55 }
 0x243   : > { %802 = vmatmul.mubr.bf16.vlgmr.msra.gmra.mrb[0].mxu1 %v462_v57 }
 0x316   : > { %v568_v59 = vpop.f32.mrb[0].mxu1 }
 0x317   : > { %v569_v60 = vadd.f32 %v731_v58, %v568_v59  ;;  %v803_v61 = vpop.f32.mrb[1].mxu1 }
 0x318   : > { %v571_v62 = vpop.f32.mrb[2].mxu1 }
 0x319   : > { %575 = vst [vmem:[%s296_s26] sm:$0xff] %v569_v60  ;;  %v572_v63 = vadd.f32 %v731_v58, %v571_v62  ;;  %v804_v0 = vpop.f32.mrb[3].mxu1 }
 0x31b   : > { %576 = vst [vmem:[%s296_s26 + $0x8] sm:$0xff] %v572_v63 }
 0x31c   : > { %1074 = shalt.err (!%p1071_p13)
}
 0x31d   : > { %s1075_s11 = scalar_lea.hbm %s1443_s6, 256  ;;  %s1079_s13 = scalar_lea.hbm %s1492_s5, 512 }
 0x31e   : > { %p1076_p9 = scmp.ne.s32.totalorder %s1443_s6, %s1075_s11  ;;  %p1080_p6 = scmp.lt.u32.totalorder %s1443_s6, %s1492_s5 }
 0x31f   : > { %p1081_p4 = scmp.lt.u32.totalorder %s1079_s13, %s1075_s11  ;;  %p1083_p3 = scmp.lt.u32.totalorder %s1075_s11, %s1443_s6 }
 0x320   : > { %p1077_p0 = pnand %p1076_p9, %p1344_p10 }
 0x321   : > { %p1082_p8 = por %p1081_p4, %p1080_p6 }
 0x322   : > { %p1078_p11 = pneg %p1077_p0 }
 0x323   : > { %p1084_p5 = por %p1083_p3, %p1082_p8 }
 0x325   : > { %p1085_p7 = pnand %p1084_p5, %p1078_p11 }
 0x327   : > { %1088 = shalt.err (!%p1085_p7)
}
 0x328   : > { %s1147_s27 = smov 128   ;;  %s1148_s15 = smov 8  }
 0x329   : > { %823 = dma.vmem_to_hbm [thread:$0]  (%p1344_p10), %s1438_s23, 256, %s1443_s6, %s578_s28, %s1147_s27, %s1147_s27, %s1148_s15  }
 0x32a PF: > { %s606_s16 = sand.u32 1, %s1123_s18   ;;  %p1510_p12 = scmp.ne.s32.totalorder %s1497_s25, 0 }
 0x32b   : > { %p1511_p1 = scmp.ge.s32.totalorder %s1135_s21, 2  ;;  %s607_s22 = scalar_lea.sflag [#allocation4], %s606_s16 }
 0x32d   : > { %p843_p2 = pnand %p1511_p1, %p1510_p12 }
 0x32f   : > { %1118 = dma.done.wait (!%p843_p2), %s607_s22, 256  }
 0x330   : > { %1120 = vsyncadd (!%p843_p2), %s607_s22, 4294967040  ;;  %p20_p13 = scmp.ge.s32.totalorder %s1334_s14, 4   ;;  %s1512_s18 = smov %s1127_s19 }
 0x331   : > { %s1513_s19 = smov %s1131_s20  ;;  %s1514_s20 = smov %s1350_s9 }
 0x332   : > { %s1515_s21 = smov %s1334_s14  ;;  %22 = sbr.rel (!%p20_p13) target bundleno = 7 (0x7), region = 101 }
 0x339   :  { %612 = vsyncpa [#allocation3], 1 }
 0x33a   :  { %614 = vsyncpa [#allocation3 + $0x1], 1 }
 0x33b   :  { %615 = vsyncpa [#allocation6], 1 }
 0x33c   :  { %616 = vsyncpa [#allocation9], 1 }
 0x33d   :  { %617 = vsyncpa [#allocation4], 1 }
 0x33e   :  { %619 = vsyncpa [#allocation4 + $0x1], 1 }

// kernel: tpu_custom_call.1
= control target key start
LH: loop header
LB: loop body
LE: loop exit
PB: predicated region body
PF: predicated region fallthrough
CT: control target
= control target key end

     0   :  { %10 = vsyncpa [#allocation3], 0  ;;  %s1487_s0 = inlined_call_operand.hbm [shape: bf16[32,128], index: 0, kind: input, shape index: {}]   ;;  %s1488_s1 = inlined_call_operand.hbm [shape: bf16[128,128], index: 1, kind: input, shape index: {}]   ;;  %s1489_s2 = inlined_call_operand.hbm [shape: f32[3,128], index: 2, kind: input, shape index: {}]   ;;  %s1490_s3 = inlined_call_operand.hbm [shape: bf16[128,128], index: 3, kind: input, shape index: {}]   ;;  %s1491_s4 = inlined_call_operand.hbm [shape: f32[1,128], index: 4, kind: input, shape index: {}]   ;;  %s1492_s5 = inlined_call_operand.hbm [shape: f32[32,128], index: 5, kind: output, shape index: {}]  }
   0x1   :  { %12 = vsyncpa [#allocation3 + $0x1], 0 }
   0x2   :  { %13 = vsyncpa [#allocation6], 0 }
   0x3   :  { %14 = vsyncpa [#allocation9], 0 }
   0x4   :  { %15 = vsyncpa [#allocation4], 0 }
   0x5   :  { %17 = vsyncpa [#allocation4 + $0x1], 0  ;;  %s1179_s18 = smov 0   ;;  %s1181_s19 = smov 0  }
   0x6   :  { %s1183_s20 = smov 0   ;;  %s1185_s21 = smov 0  }
   0x7 LB: > { %s1200_s22 = sadd.s32 4294967295, %s1135_s21   ;;  %s702_s23 = sadd.s32 4294967294, %s1135_s21   ;;  %s1135_s21 = sphi %s1185_s21, %s1515_s21   ;;  %s1131_s20 = sphi %s1183_s20, %s1514_s20   ;;  %s1127_s19 = sphi %s1181_s19, %s1513_s19   ;;  %s1123_s18 = sphi %s1179_s18, %s1512_s18  }
   0x8   : > { %p43_p0 = scmp.ne.s32.totalorder %s1127_s19, %s1123_s18  ;;  %p1493_p1 = scmp.eq.s32.totalorder %s1200_s22, 0 }
   0x9   : > { %p157_p3 = scmp.eq.s32.totalorder %s702_s23, 1  ;;  %p703_p5 = scmp.ge.s32.totalorder %s1135_s21, 1 }
   0xa   : > { %p1209_p4 = por %p1493_p1, %p43_p0  ;;  %p164_p7 = scmp.lt.s32.totalorder %s1135_s21, 3 }
   0xb   : > { %p1214_p6 = por %p157_p3, %p43_p0  ;;  %s1137_s27 = smov [#allocation5]  }
   0xc   : > { %s1496_s24 = scalar_select %p1209_p4, 1, 0 }
   0xd   : > { %s1497_s25 = scalar_select %p1214_p6, 1, 0 }
   0xe   : > { %p1219_p8 = pnand %p703_p5, %p164_p7  ;;  %s176_s28 = sshll.u32 %s1137_s27, 4  ;;  %s1223_s28 = int_to_ptr.vmem [resolvable:$true] %s176_s28 }
   0xf   : > { %s1138_s30 = smov [#allocation8]   ;;  %s1139_s7 = smov [#allocation7]  }
  0x10   : > { %s1498_s26 = scalar_select %p1219_p8, 1, 0 }
  0x11   : > { %p825_p9 = pneg %p1219_p8  ;;  %s200_s6 = sshll.u32 %s1138_s30, 4  ;;  %s1234_s6 = int_to_ptr.vmem [resolvable:$true] %s200_s6 }
  0x12   : > { %s1236_s8 = sshll.u32 %s1139_s7, 4  ;;  %s919_s11 = scalar_lea.hbm %s1488_s1, 1024  ;;  %s191_s8 = int_to_ptr.vmem [resolvable:$true] %s1236_s8 }
  0x13   : > { %p1230_p11 = pnand %p825_p9, %p1493_p1  ;;  %p920_p12 = scmp.ne.s32.totalorder %s1488_s1, %s919_s11 }
  0x14   : > { %p926_p5 = scmp.lt.u32.totalorder %s919_s11, %s1488_s1 }
  0x15   : > { %p1246_p13 = pneg %p1230_p11 }
  0x17   : > { %p922_p0 = pnand %p1246_p13, %p920_p12 }
  0x19   : > { %p923_p3 = pneg %p922_p0 }
  0x1b   : > { %p928_p7 = pnand %p926_p5, %p923_p3 }
  0x1d   : > { %931 = shalt.err (!%p928_p7)
}
  0x1e   : > { %s932_s17 = scalar_lea.vmem %s1223_s28, 1024  ;;  %p940_p2 = scmp.lt.s32.totalorder %s1223_s28, %s1223_s28 }
  0x1f   : > { %p933_p9 = scmp.ne.s32.totalorder %s1223_s28, %s932_s17  ;;  %p941_p6 = scmp.lt.s32.totalorder %s932_s17, %s932_s17 }
  0x21   : > { %p935_p10 = pnand %p933_p9, %p1246_p13  ;;  %p942_p12 = por %p941_p6, %p940_p2 }
  0x23   : > { %p936_p1 = pneg %p935_p10 }
  0x25   : > { %p943_p0 = pnand %p942_p12, %p936_p1 }
  0x27   : > { %946 = shalt.err (!%p943_p0)
}
  0x28   : > { %s1140_s23 = smov 64   ;;  %s1141_s27 = smov 4  }
  0x29   : > { %828 = dma.hbm_to_vmem [thread:$0]  (!%p1230_p11), %s1488_s1, 1024, %s1223_s28, [#allocation6], %s1140_s23, %s1140_s23, %s1141_s27  }
  0x2a   : > { %s947_s11 = scalar_lea.hbm %s1490_s3, 1024 }
  0x2b   : > { %p948_p1 = scmp.ne.s32.totalorder %s1490_s3, %s947_s11  ;;  %p954_p10 = scmp.lt.u32.totalorder %s947_s11, %s1490_s3 }
  0x2d   : > { %p950_p2 = pnand %p948_p1, %p1246_p13 }
  0x2f   : > { %p951_p6 = pneg %p950_p2 }
  0x31   : > { %p956_p3 = pnand %p954_p10, %p951_p6 }
  0x33   : > { %959 = shalt.err (!%p956_p3)
}
  0x34   : > { %s960_s28 = scalar_lea.vmem %s1234_s6, 1024  ;;  %p968_p12 = scmp.lt.s32.totalorder %s1234_s6, %s1234_s6 }
  0x35   : > { %p961_p5 = scmp.ne.s32.totalorder %s1234_s6, %s960_s28  ;;  %p969_p0 = scmp.lt.s32.totalorder %s960_s28, %s960_s28 }
  0x37   : > { %p963_p7 = pnand %p961_p5, %p1246_p13  ;;  %p970_p1 = por %p969_p0, %p968_p12 }
  0x39   : > { %p964_p9 = pneg %p963_p7 }
  0x3b   : > { %p971_p2 = pnand %p970_p1, %p964_p9 }
  0x3d   : > { %974 = shalt.err (!%p971_p2)
}
  0x3e   : > { %834 = dma.hbm_to_vmem [thread:$0]  (!%p1230_p11), %s1490_s3, 1024, %s1234_s6, [#allocation9], %s1140_s23, %s1140_s23, %s1141_s27  }
  0x3f   : > { %s975_s10 = scalar_lea.hbm %s1489_s2, 64 }
  0x40   : > { %p976_p6 = scmp.ne.s32.totalorder %s1489_s2, %s975_s10  ;;  %p982_p5 = scmp.lt.u32.totalorder %s975_s10, %s1489_s2 }
  0x42   : > { %p978_p10 = pnand %p976_p6, %p1246_p13 }
  0x44   : > { %p979_p3 = pneg %p978_p10 }
  0x46   : > { %p984_p7 = pnand %p982_p5, %p979_p3 }
  0x48   : > { %987 = shalt.err (!%p984_p7)
}
  0x49   : > { %s988_s16 = scalar_lea.vmem %s191_s8, 64  ;;  %p996_p1 = scmp.lt.s32.totalorder %s191_s8, %s191_s8 }
  0x4a   : > { %p989_p9 = scmp.ne.s32.totalorder %s191_s8, %s988_s16  ;;  %p997_p2 = scmp.lt.s32.totalorder %s988_s16, %s988_s16 }
  0x4c   : > { %p991_p12 = pnand %p989_p9, %p1246_p13  ;;  %p998_p4 = por %p997_p2, %p996_p1 }
  0x4e   : > { %p992_p0 = pneg %p991_p12 }
  0x50   : > { %p999_p8 = pnand %p998_p4, %p992_p0 }
  0x52   : > { %1002 = shalt.err (!%p999_p8)
}
  0x53   : > { %831 = dma.hbm_to_vmem [thread:$0]  (!%p1230_p11), %s1489_s2, 64, %s191_s8, [#allocation6]  }
  0x54   : > { %s1142_s17 = smov [#allocation10]   ;;  %s1003_s10 = scalar_lea.hbm %s1491_s4, 16 }
  0x55   : > { %s214_s30 = sshll.u32 %s1142_s17, 4  ;;  %p1004_p6 = scmp.ne.s32.totalorder %s1491_s4, %s1003_s10  ;;  %s215_s30 = int_to_ptr.vmem [resolvable:$true] %s214_s30 }
  0x56   : > { %p1010_p10 = scmp.lt.u32.totalorder %s1003_s10, %s1491_s4 }
  0x57   : > { %p1006_p4 = pnand %p1004_p6, %p1246_p13 }
  0x59   : > { %p1007_p8 = pneg %p1006_p4 }
  0x5b   : > { %p1012_p3 = pnand %p1010_p10, %p1007_p8 }
  0x5d   : > { %1015 = shalt.err (!%p1012_p3)
}
  0x5e   : > { %s1016_s8 = scalar_lea.vmem %s215_s30, 16  ;;  %s1023_s16 = scalar_lea.vmem %s215_s30, 32 }
  0x5f   : > { %p1017_p5 = scmp.ne.s32.totalorder %s215_s30, %s1016_s8  ;;  %p1024_p12 = scmp.lt.s32.totalorder %s215_s30, %s215_s30 }
  0x60   : > { %p1025_p0 = scmp.lt.s32.totalorder %s1023_s16, %s1016_s8 }
  0x61   : > { %p1019_p7 = pnand %p1017_p5, %p1246_p13 }
  0x62   : > { %p1026_p1 = por %p1025_p0, %p1024_p12 }
  0x63   : > { %p1020_p9 = pneg %p1019_p7 }
  0x65   : > { %p1027_p2 = pnand %p1026_p1, %p1020_p9 }
  0x67   : > { %1030 = shalt.err (!%p1027_p2)
}
  0x68   : > { %837 = dma.hbm_to_vmem [thread:$0]  (!%p1230_p11), %s1491_s4, 16, %s215_s30, [#allocation9]  }
  0x69   : > { %s1334_s14 = sadd.s32 1, %s1135_s21   ;;  %s30_s17 = sadd.s32 1, %s1131_s20 }
  0x6a   : > { %s27_s29 = ssub.s32 %s1135_s21, %s1334_s14  ;;  %p37_p13 = scmp.ne.s32.totalorder %s1131_s20, %s1127_s19 }
  0x6b   : > { %p28_p6 = scmp.eq.s32.totalorder %s27_s29, 0  ;;  %p38_p4 = scmp.eq.s32.totalorder %s1135_s21, 0 }
  0x6c   : > { %p1501_p8 = scmp.eq.s32.totalorder %s1200_s22, 1  ;;  %p850_p3 = scmp.lt.s32.totalorder %s1135_s21, 2 }
  0x6d   : > { %s1350_s9 = scalar_select %p28_p6, %s1131_s20, %s30_s17  }
  0x6e   : > { %p1344_p10 = por %p1501_p8, %p37_p13  ;;  %p39_p5 = por %p38_p4, %p37_p13 }
  0x6f   : > { %s225_s10 = sand.u32 1, %s1131_s20   ;;  %s745_s30 = sshll.u32 %s1135_s21, 7 }
  0x70   : > { %s709_s11 = sshll.u32 %s225_s10, 3  ;;  %s1357_s15 = scalar_lea.hbm %s1487_s0, %s745_s30 }
  0x71   : > { %s229_s8 = scalar_lea.vmem [#allocation2], %s709_s11  ;;  %p1361_p11 = pnand %p850_p3, %p39_p5 }
  0x72   : > { %s236_s16 = sshll.u32 %s229_s8, 4  ;;  %s1365_s28 = scalar_lea.sflag [#allocation3], %s225_s10  ;;  %s1359_s16 = int_to_ptr.vmem [resolvable:$true] %s236_s16 }
  0x73   : > { %s1031_s17 = scalar_lea.hbm %s1357_s15, 128  ;;  %p1033_p9 = pneg %p1361_p11 }
  0x74   : > { %p1032_p7 = scmp.ne.s32.totalorder %s1357_s15, %s1031_s17  ;;  %s1036_s30 = scalar_lea.hbm %s1487_s0, 256 }
  0x75   : > { %p1037_p1 = scmp.lt.u32.totalorder %s1357_s15, %s1487_s0  ;;  %p1038_p2 = scmp.lt.u32.totalorder %s1036_s30, %s1031_s17 }
  0x76   : > { %p1034_p12 = pnand %p1033_p9, %p1032_p7  ;;  %p1040_p6 = scmp.lt.u32.totalorder %s1031_s17, %s1357_s15 }
  0x77   : > { %p1039_p13 = por %p1038_p2, %p1037_p1 }
  0x78   : > { %p1035_p0 = pneg %p1034_p12 }
  0x79   : > { %p1041_p4 = por %p1040_p6, %p1039_p13 }
  0x7b   : > { %p1042_p8 = pnand %p1041_p4, %p1035_p0 }
  0x7d   : > { %1045 = shalt.err (!%p1042_p8)
}
  0x7e   : > { %s1046_s10 = scalar_lea.vmem %s1359_s16, 128  ;;  %s1143_s8 = smov [#allocation2]  }
  0x7f   : > { %p1047_p3 = scmp.ne.s32.totalorder %s1359_s16, %s1046_s10  ;;  %s1051_s29 = sshll.u32 %s1143_s8, 4  ;;  %s1052_s29 = int_to_ptr.vmem [resolvable:$false] %s1051_s29 }
  0x80   : > { %s1053_s11 = scalar_lea.vmem %s1052_s29, 256  ;;  %p1054_p12 = scmp.lt.s32.totalorder %s1359_s16, %s1052_s29 }
  0x81   : > { %p1049_p5 = pnand %p1047_p3, %p1033_p9  ;;  %p1055_p1 = scmp.lt.s32.totalorder %s1053_s11, %s1046_s10 }
  0x83   : > { %p1050_p7 = pneg %p1049_p5  ;;  %p1056_p2 = por %p1055_p1, %p1054_p12 }
  0x85   : > { %p1057_p13 = pnand %p1056_p2, %p1050_p7 }
  0x87   : > { %1060 = shalt.err (!%p1057_p13)
}
  0x88   : > { %841 = dma.hbm_to_vmem [thread:$0]  (!%p1361_p11), %s1357_s15, 128, %s1359_s16, %s1365_s28, %s1140_s23, %s1140_s23, %s1141_s27  }
  0x89   : > { %p1504_p9 = scmp.ne.s32.totalorder %s1498_s26, 0 }
  0x8a   : > { %s1399_s17 = sand.u32 (!%p1504_p9), 1, %s1127_s19   ;;  %p1505_p0 = scmp.ne.s32.totalorder (!%p1504_p9), %s1496_s24, 0 }
  0x8b   : > { %248 = sbr.rel (%p1504_p9) target bundleno = 810 (0x32a), region = 40  ;;  %s713_s30 = sshll.u32 (!%p1504_p9), %s1399_s17, 3 }
  0x8c   : > { %s251_s12 = scalar_lea.sflag (!%p1504_p9), [#allocation3], %s1399_s17  ;;  %s1403_s13 = scalar_lea.vmem (!%p1504_p9), [#allocation2], %s713_s30 }
  0x92   : > { %1106 = dma.done.wait (%p1505_p0), %s251_s12, 128  }
  0x93   : > { %1108 = vsyncadd (%p1505_p0), %s251_s12, 4294967168  ;;  %p1506_p11 = scmp.eq.s32.totalorder %s1200_s22, 0 }
  0x95   : > { %1110 = dma.done.wait (%p1506_p11), [#allocation6], 1088   ;;  %p1507_p6 = pmov %p1506_p11 }
  0x97   : > { %1112 = vsyncadd (%p1507_p6), [#allocation6], 4294966208  ;;  %p1508_p4 = pmov %p1507_p6 }
  0x99   : > { %1114 = dma.done.wait (%p1508_p4), [#allocation9], 1040   ;;  %p1509_p8 = pmov %p1508_p4 }
  0x9a   : > { %v1144_v0 = vmov 0.0   ;;  %vm1145_vm0 = vmmov 0   ;;  %v898_v1 = vld [vmem:[#allocation5] sm:$0xff]   ;;  %v899_v2 = vld [vmem:[#allocation5 + $0x8] sm:$0xff]   ;;  %v900_v3 = vld [vmem:[#allocation5 + $0x10] sm:$0xff]   ;;  %s718_s24 = sshll.u32 %s1399_s17, 4 }
  0x9b   : > { %1116 = vsyncadd (%p1509_p8), [#allocation9], 4294966256  ;;  %765 = vmatprep.subr.bf16.mxu0 %v1144_v0  ;;  %781 = vmatprep.mubr.msk.bf16.mxu0 %vm1145_vm0, %v1144_v0  ;;  %v901_v4 = vld [vmem:[#allocation5 + $0x18] sm:$0xff]   ;;  %v902_v5 = vld [vmem:[#allocation5 + $0x20] sm:$0xff]   ;;  %s296_s26 = scalar_lea.vmem [#allocation11], %s718_s24  ;;  %s746_s27 = sshll.u32 %s1200_s22, 8 }
  0x9c   : > { %785 = vmatprep.subr.bf16.mxu1 %v1144_v0  ;;  %801 = vmatprep.mubr.msk.bf16.mxu1 %vm1145_vm0, %v1144_v0  ;;  %v903_v6 = vld [vmem:[#allocation5 + $0x28] sm:$0xff]   ;;  %v904_v7 = vld [vmem:[#allocation5 + $0x30] sm:$0xff]   ;;  %v905_v8 = vld [vmem:[#allocation5 + $0x38] sm:$0xff]   ;;  %s591_s23 = sshll.u32 %s296_s26, 4  ;;  %s1443_s6 = scalar_lea.hbm %s1492_s5, %s746_s27  ;;  %s1438_s23 = int_to_ptr.vmem [resolvable:$true] %s591_s23 }
  0x9d   : > { %766 = vmatpush3.bf16.msra.mxu0 %v898_v1  ;;  %v906_v9 = vld [vmem:[%s1403_s13] sm:$0xff]   ;;  %v719_v10 = vld [vmem:[#allocation7] ss:$0 sm:$0xff]  ;;  %v907_v21 = vld [vmem:[#allocation8] sm:$0xff]   ;;  %s578_s28 = scalar_lea.sflag [#allocation4], %s1399_s17  ;;  %s1061_s22 = scalar_lea.vmem %s1438_s23, 256 }
  0x9e   : > { %767 = vmatprep.subr.bf16.mxu0 %v1144_v0  ;;  %786 = vmatpush3.bf16.msra.mxu1 %v907_v21  ;;  %v908_v22 = vld [vmem:[#allocation8 + $0x8] sm:$0xff]   ;;  %v909_v23 = vld [vmem:[#allocation8 + $0x10] sm:$0xff]   ;;  %v910_v24 = vld [vmem:[#allocation8 + $0x18] sm:$0xff]   ;;  %p1062_p3 = scmp.ne.s32.totalorder %s1438_s23, %s1061_s22  ;;  %s1146_s10 = smov [#allocation11]  }
  0x9f   : > { %787 = vmatprep.subr.bf16.mxu1 %v1144_v0  ;;  %v911_v25 = vld [vmem:[#allocation8 + $0x20] sm:$0xff]   ;;  %v912_v26 = vld [vmem:[#allocation8 + $0x28] sm:$0xff]   ;;  %v913_v27 = vld [vmem:[#allocation8 + $0x30] sm:$0xff]   ;;  %s1065_s8 = sshll.u32 %s1146_s10, 4  ;;  %s1066_s8 = int_to_ptr.vmem [resolvable:$false] %s1065_s8 }
  0xa0   : > { %v914_v28 = vld [vmem:[#allocation8 + $0x38] sm:$0xff]   ;;  %v731_v58 = vld [vmem:[#allocation10] ss:$0 sm:$0xff]  ;;  %p1063_p5 = pnand %p1062_p3, %p1344_p10  ;;  %s1067_s29 = scalar_lea.vmem %s1066_s8, 512 }
  0xa1   : > { %768 = vmatpush3.bf16.msra.mxu0 %v899_v2  ;;  %v729_v48 = vld [vmem:[#allocation7 + $0x1] ss:$0 sm:$0xff]  ;;  %v730_v53 = vld [vmem:[#allocation7 + $0x2] ss:$0 sm:$0xff]  ;;  %p1068_p12 = scmp.lt.s32.totalorder %s1438_s23, %s1066_s8  ;;  %p1069_p1 = scmp.lt.s32.totalorder %s1067_s29, %s1061_s22 }
  0xa2   : > { %769 = vmatprep.subr.bf16.mxu0 %v1144_v0  ;;  %788 = vmatpush3.bf16.msra.mxu1 %v908_v22  ;;  %p1064_p7 = pneg %p1063_p5 }
  0xa3   : > { %789 = vmatprep.subr.bf16.mxu1 %v1144_v0  ;;  %p1070_p2 = por %p1069_p1, %p1068_p12 }
  0xa5   : > { %770 = vmatpush3.bf16.msra.mxu0 %v900_v3  ;;  %p1071_p13 = pnand %p1070_p2, %p1064_p7 }
  0xa6   : > { %771 = vmatprep.subr.bf16.mxu0 %v1144_v0  ;;  %790 = vmatpush3.bf16.msra.mxu1 %v909_v23 }
  0xa7   : > { %791 = vmatprep.subr.bf16.mxu1 %v1144_v0 }
  0xa9   : > { %772 = vmatpush3.bf16.msra.mxu0 %v901_v4 }
  0xaa   : > { %773 = vmatprep.subr.bf16.mxu0 %v1144_v0  ;;  %792 = vmatpush3.bf16.msra.mxu1 %v910_v24 }
  0xab   : > { %793 = vmatprep.subr.bf16.mxu1 %v1144_v0 }
  0xad   : > { %774 = vmatpush3.bf16.msra.mxu0 %v902_v5 }
  0xae   : > { %775 = vmatprep.subr.bf16.mxu0 %v1144_v0  ;;  %794 = vmatpush3.bf16.msra.mxu1 %v911_v25 }
  0xaf   : > { %795 = vmatprep.subr.bf16.mxu1 %v1144_v0 }
  0xb1   : > { %776 = vmatpush3.bf16.msra.mxu0 %v903_v6 }
  0xb2   : > { %777 = vmatprep.subr.bf16.mxu0 %v1144_v0  ;;  %796 = vmatpush3.bf16.msra.mxu1 %v912_v26 }
  0xb3   : > { %797 = vmatprep.subr.bf16.mxu1 %v1144_v0 }
  0xb5   : > { %778 = vmatpush3.bf16.msra.mxu0 %v904_v7 }
  0xb6   : > { %779 = vmatprep.subr.bf16.mxu0 %v1144_v0  ;;  %798 = vmatpush3.bf16.msra.mxu1 %v913_v27 }
  0xb7   : > { %799 = vmatprep.subr.bf16.mxu1 %v1144_v0 }
  0xb9   : > { %780 = vmatpush3.bf16.msra.mxu0 %v905_v8 }
  0xba   : > { %800 = vmatpush3.bf16.msra.mxu1 %v914_v28 }
  0xbc   : > { %782 = vmatmul.mubr.bf16.vlgmr.msra.gmra.mrb[0].mxu0 %v906_v9 }
 0x18f   : > { %v411_v11 = vpop.f32.mrb[0].mxu0 }
 0x190   : > { %v412_v12 = vadd.f32 %v719_v10, %v411_v11  ;;  %v783_v13 = vpop.f32.mrb[1].mxu0 }
 0x191   : > { %v414_v14 = vpop.f32.mrb[2].mxu0 }
 0x192   : > { %v418_v15 = vmax.f32 %v412_v12, 0.0  ;;  %v415_v16 = vadd.f32 %v719_v10, %v414_v14  ;;  %v784_v17 = vpop.f32.mrb[3].mxu0 }
 0x194   : > { %v419_v18 = vmax.f32 %v415_v16, 0.0  ;;  %420 = vadd.xlane.f32.xlu0 %v418_v15  ;;  %v426_v19 = vmul.f32 %v418_v15, %v418_v15 }
 0x196   : > { %428 = vadd.xlane.f32.xlu1 %v426_v19  ;;  %v427_v20 = vmul.f32 %v419_v18, %v419_v18 }
 0x198   : > { %422 = vadd.xlane.f32.xlu0 %v419_v18 }
 0x19a   : > { %430 = vadd.xlane.f32.xlu1 %v427_v20 }
 0x221   : > { %v421_v29 = vpop.xlane.xlu0 %420 }
 0x222   : > { %v424_v30 = vmul.f32 0.015625, %v421_v29 }
 0x223   : > { %v429_v31 = vpop.xlane.xlu1 %428 }
 0x224   : > { %v434_v32 = vmul.f32 %v424_v30, %v424_v30  ;;  %v432_v33 = vmul.f32 0.015625, %v429_v31  ;;  %v440_v45 = vsub.f32 %v418_v15, %v424_v30 }
 0x225   : > { %v423_v34 = vpop.xlane.xlu0 %422 }
 0x226   : > { %v436_v35 = vsub.f32 %v432_v33, %v434_v32  ;;  %v425_v36 = vmul.f32 0.015625, %v423_v34 }
 0x227   : > { %v431_v37 = vpop.xlane.xlu1 %430 }
 0x228   : > { %v438_v38 = vmax.f32 %v436_v35, 0.0  ;;  %v435_v39 = vmul.f32 %v425_v36, %v425_v36  ;;  %v433_v40 = vmul.f32 0.015625, %v431_v37  ;;  %v441_v49 = vsub.f32 %v419_v18, %v425_v36 }
 0x22a   : > { %v442_v41 = vadd.f32 1e-05, %v438_v38  ;;  %v437_v42 = vsub.f32 %v433_v40, %v435_v39 }
 0x22c   : > { %915 = vrsqrt.f32 %v442_v41  ;;  %v439_v43 = vmax.f32 %v437_v42, 0.0 }
 0x22e   : > { %v443_v44 = vadd.f32 1e-05, %v439_v43 }
 0x230   : > { %917 = vrsqrt.f32 %v443_v44 }
 0x236   : > { %v916_v46 = vpop.eup %915 }
 0x237   : > { %v446_v47 = vmul.f32 %v916_v46, %v440_v45 }
 0x239   : > { %v453_v52 = vmul.f32 %v729_v48, %v446_v47 }
 0x23a   : > { %v918_v50 = vpop.eup %917 }
 0x23b   : > { %v447_v51 = vmul.f32 %v918_v50, %v441_v49  ;;  %v460_v55 = vadd.f32 %v730_v53, %v453_v52 }
 0x23d   : > { %v454_v54 = vmul.f32 %v729_v48, %v447_v51 }
 0x23f   : > { %v461_v56 = vadd.f32 %v730_v53, %v454_v54 }
 0x241   : > { %v462_v57 = vpack.c.bf16 %v461_v56, %v460_v55 }
 0x243   : > { %802 = vmatmul.mubr.bf16.vlgmr.msra.gmra.mrb[0].mxu1 %v462_v57 }
 0x316   : > { %v568_v59 = vpop.f32.mrb[0].mxu1 }
 0x317   : > { %v569_v60 = vadd.f32 %v731_v58, %v568_v59  ;;  %v803_v61 = vpop.f32.mrb[1].mxu1 }
 0x318   : > { %v571_v62 = vpop.f32.mrb[2].mxu1 }
 0x319   : > { %575 = vst [vmem:[%s296_s26] sm:$0xff] %v569_v60  ;;  %v572_v63 = vadd.f32 %v731_v58, %v571_v62  ;;  %v804_v0 = vpop.f32.mrb[3].mxu1 }
 0x31b   : > { %576 = vst [vmem:[%s296_s26 + $0x8] sm:$0xff] %v572_v63 }
 0x31c   : > { %1074 = shalt.err (!%p1071_p13)
}
 0x31d   : > { %s1075_s11 = scalar_lea.hbm %s1443_s6, 256  ;;  %s1079_s13 = scalar_lea.hbm %s1492_s5, 512 }
 0x31e   : > { %p1076_p9 = scmp.ne.s32.totalorder %s1443_s6, %s1075_s11  ;;  %p1080_p6 = scmp.lt.u32.totalorder %s1443_s6, %s1492_s5 }
 0x31f   : > { %p1081_p4 = scmp.lt.u32.totalorder %s1079_s13, %s1075_s11  ;;  %p1083_p3 = scmp.lt.u32.totalorder %s1075_s11, %s1443_s6 }
 0x320   : > { %p1077_p0 = pnand %p1076_p9, %p1344_p10 }
 0x321   : > { %p1082_p8 = por %p1081_p4, %p1080_p6 }
 0x322   : > { %p1078_p11 = pneg %p1077_p0 }
 0x323   : > { %p1084_p5 = por %p1083_p3, %p1082_p8 }
 0x325   : > { %p1085_p7 = pnand %p1084_p5, %p1078_p11 }
 0x327   : > { %1088 = shalt.err (!%p1085_p7)
}
 0x328   : > { %s1147_s27 = smov 128   ;;  %s1148_s15 = smov 8  }
 0x329   : > { %823 = dma.vmem_to_hbm [thread:$0]  (%p1344_p10), %s1438_s23, 256, %s1443_s6, %s578_s28, %s1147_s27, %s1147_s27, %s1148_s15  }
 0x32a PF: > { %s606_s16 = sand.u32 1, %s1123_s18   ;;  %p1510_p12 = scmp.ne.s32.totalorder %s1497_s25, 0 }
 0x32b   : > { %p1511_p1 = scmp.ge.s32.totalorder %s1135_s21, 2  ;;  %s607_s22 = scalar_lea.sflag [#allocation4], %s606_s16 }
 0x32d   : > { %p843_p2 = pnand %p1511_p1, %p1510_p12 }
 0x32f   : > { %1118 = dma.done.wait (!%p843_p2), %s607_s22, 256  }
 0x330   : > { %1120 = vsyncadd (!%p843_p2), %s607_s22, 4294967040  ;;  %p20_p13 = scmp.ge.s32.totalorder %s1334_s14, 4   ;;  %s1512_s18 = smov %s1127_s19 }
 0x331   : > { %s1513_s19 = smov %s1131_s20  ;;  %s1514_s20 = smov %s1350_s9 }
 0x332   : > { %s1515_s21 = smov %s1334_s14  ;;  %22 = sbr.rel (!%p20_p13) target bundleno = 7 (0x7), region = 101 }
 0x339   :  { %612 = vsyncpa [#allocation3], 1 }
 0x33a   :  { %614 = vsyncpa [#allocation3 + $0x1], 1 }
 0x33b   :  { %615 = vsyncpa [#allocation6], 1 }
 0x33c   :  { %616 = vsyncpa [#allocation9], 1 }
 0x33d   :  { %617 = vsyncpa [#allocation4], 1 }
 0x33e   :  { %619 = vsyncpa [#allocation4 + $0x1], 1 }

</bundles_post_ra>
